<compile_context>
chip_gen: v5e
topology: v5e:2x2
jax: 0.10.0
libtpu: 0.0.40
codegen_flags: <defaults>
</compile_context>

<pallas_src>
import numpy as np
import jax
import jax.numpy as jnp
from jax.experimental import pallas as pl
from jax.experimental.pallas import tpu as pltpu


def _round_up(x, m):
    return ((x + m - 1) // m) * m


def _pad2(a, rows, cols):
    return jnp.pad(a, ((0, rows - a.shape[0]), (0, cols - a.shape[1])))


def _decoder_kernel(z_ref, w1_ref, b1_ref, w2_ref, b2_ref, w3_ref, b3_ref, o_ref):
    # Fused 3-layer MLP + ReLU + sigmoid for one (TB, TN) output tile.
    # Layers 1 and 2 are tiny and recomputed per out_dim tile; layer 3 dominates.
    z = z_ref[...]
    h1 = jnp.dot(z, w1_ref[...], preferred_element_type=jnp.float32) + b1_ref[...]
    h1 = jnp.maximum(h1, 0.0).astype(w2_ref.dtype)                     # ReLU
    h2 = jnp.dot(h1, w2_ref[...], preferred_element_type=jnp.float32) + b2_ref[...]
    h2 = jnp.maximum(h2, 0.0).astype(w3_ref.dtype)                     # ReLU
    logits = jnp.dot(h2, w3_ref[...], preferred_element_type=jnp.float32) + b3_ref[...]
    o_ref[...] = jax.nn.sigmoid(logits).astype(o_ref.dtype)            # Bernoulli probs


def bernoulli_decoder_probs(z, w1, b1, w2, b2, w3, b3, *,
                            compute_dtype=jnp.bfloat16,
                            out_dtype=jnp.float32,
                            tb=256, tn=512):
    """Bernoulli probabilities, shape (B, img_size[0]*img_size[1]*img_size[2]).

    Weights are stored as (in_features, out_features); biases as (1, out_features).
    """
    B, dim_z = z.shape
    dim_h = w1.shape[1]
    dim_h2 = w2.shape[1]
    out_dim = w3.shape[1]

    # Lane/sublane-aligned padded sizes (zero padding is numerically exact:
    # padded hidden units see zero weights + zero bias -> ReLU(0) = 0).
    dz_p = _round_up(dim_z, 128)
    dh_p = _round_up(dim_h, 128)
    dh2_p = _round_up(dim_h2, 128)

    TB = min(tb, _round_up(B, 8))          # batch tile (sublane multiple of 8)
    B_p = _round_up(B, TB)
    TN = min(tn, _round_up(out_dim, 128))  # out_dim tile (lane multiple of 128)
    out_p = _round_up(out_dim, TN)

    cdt = compute_dtype
    z_p = _pad2(z, B_p, dz_p).astype(cdt)
    w1_p = _pad2(w1, dz_p, dh_p).astype(cdt)
    w2_p = _pad2(w2, dh_p, dh2_p).astype(cdt)
    w3_p = _pad2(w3, dh2_p, out_p).astype(cdt)
    # Biases stay f32: they are added to the f32 MXU accumulator.
    b1_p = _pad2(b1.reshape(1, -1), 1, dh_p).astype(jnp.float32)
    b2_p = _pad2(b2.reshape(1, -1), 1, dh2_p).astype(jnp.float32)
    b3_p = _pad2(b3.reshape(1, -1), 1, out_p).astype(jnp.float32)

    gb, gn = B_p // TB, out_p // TN

    in_specs = [
        pl.BlockSpec((TB, dz_p), lambda i, j: (i, 0)),     # z: per-batch tile
        pl.BlockSpec((dz_p, dh_p), lambda i, j: (0, 0)),   # w1: resident
        pl.BlockSpec((1, dh_p), lambda i, j: (0, 0)),      # b1: resident
        pl.BlockSpec((dh_p, dh2_p), lambda i, j: (0, 0)),  # w2: resident
        pl.BlockSpec((1, dh2_p), lambda i, j: (0, 0)),     # b2: resident
        pl.BlockSpec((dh2_p, TN), lambda i, j: (0, j)),    # w3: tiled along N
        pl.BlockSpec((1, TN), lambda i, j: (0, j)),        # b3: tiled along N
    ]
    out_specs = pl.BlockSpec((TB, TN), lambda i, j: (i, j))

    # Advisory cost estimate for XLA's scheduler around the custom call.
    cit = np.dtype(cdt).itemsize
    oit = np.dtype(out_dtype).itemsize
    flops = 2 * B_p * (dz_p * dh_p + dh_p * dh2_p) * gn + 2 * B_p * dh2_p * out_p
    bytes_in = sum(int(a.size) * a.dtype.itemsize
                   for a in (z_p, w1_p, b1_p, w2_p, b2_p, w3_p, b3_p))
    cost = pl.CostEstimate(flops=int(flops),
                           transcendentals=int(B_p * out_p),
                           bytes_accessed=int(bytes_in + B_p * out_p * oit))

    # Rough VMEM need: resident small weights + double-buffered streamed tiles
    # + f32 intermediates. Only raise the scoped limit when the default (~32MiB)
    # would be exceeded; cap well below v7x's 64 MiB physical per-TC VMEM.
    resident = (dz_p * dh_p + dh_p * dh2_p) * cit + (dh_p + dh2_p) * 4
    streamed = 2 * (TB * dz_p * cit + dh2_p * TN * cit + TN * 4 + TB * TN * oit)
    scratch = TB * (dh_p + dh2_p + TN) * 4
    vmem_est = resident + streamed + scratch
    vmem_limit = None
    if vmem_est > 30 * 1024 * 1024:
        vmem_limit = min(int(vmem_est * 3 // 2), 56 * 1024 * 1024)

    probs_p = pl.pallas_call(
        _decoder_kernel,
        out_shape=jax.ShapeDtypeStruct((B_p, out_p), out_dtype),
        grid=(gb, gn),
        in_specs=in_specs,
        out_specs=out_specs,
        cost_estimate=cost,
        compiler_params=pltpu.CompilerParams(
            dimension_semantics=("parallel", "parallel"),
            vmem_limit_bytes=vmem_limit),
    )(z_p, w1_p, b1_p, w2_p, b2_p, w3_p, b3_p)

    return probs_p[:B, :out_dim]


def init_params(key, dim_z, dim_h, img_size):
    """Deterministic synthetic parameters with the shapes nn.Linear implies."""
    out_dim = img_size[0] * img_size[1] * img_size[2]
    ks = jax.random.split(key, 6)
    # Weights stored as (in, out) so the kernel computes x @ W + b directly
    # (equivalent to PyTorch x @ W.T + b with W kept transposed).
    w1 = jax.random.normal(ks[0], (dim_z, dim_h), jnp.float32) * 0.1
    b1 = jax.random.normal(ks[1], (1, dim_h), jnp.float32) * 0.1
    w2 = jax.random.normal(ks[2], (dim_h, 2 * dim_h), jnp.float32) * 0.1
    b2 = jax.random.normal(ks[3], (1, 2 * dim_h), jnp.float32) * 0.1
    w3 = jax.random.normal(ks[4], (2 * dim_h, out_dim), jnp.float32) * 0.1
    b3 = jax.random.normal(ks[5], (1, out_dim), jnp.float32) * 0.1
    return w1, b1, w2, b2, w3, b3


if __name__ == "__main__":
    # Small shapes consistent with the module: latent dim 8, hidden 32,
    # image (1, 16, 16) -> 256 flattened Bernoulli pixels, batch 2.
    B, dim_z, dim_h = 2, 8, 32
    img_size = (1, 16, 16)
    out_dim = img_size[0] * img_size[1] * img_size[2]

    key = jax.random.PRNGKey(0)
    kz, kp = jax.random.split(key)
    z = jax.random.normal(kz, (B, dim_z), jnp.float32)
    params = init_params(kp, dim_z, dim_h, img_size)
    w1, b1, w2, b2, w3, b3 = params

    # Plain-JAX f32 reference (same math, no Pallas).
    h1 = jnp.maximum(z @ w1 + b1, 0.0)
    h2 = jnp.maximum(h1 @ w2 + b2, 0.0)
    ref = jax.nn.sigmoid(h2 @ w3 + b3)

    # Exact-precision check: f32 compute path.
    probs_f32 = bernoulli_decoder_probs(z, *params, compute_dtype=jnp.float32)
    probs_f32 = jax.block_until_ready(probs_f32)
    assert probs_f32.shape == (B, out_dim)
    assert jnp.allclose(probs_f32, ref, atol=1e-5, rtol=1e-5)

    # Fast path: bf16 weights/activations, f32 MXU accumulation (looser tol).
    probs_bf16 = bernoulli_decoder_probs(z, *params, compute_dtype=jnp.bfloat16)
    probs_bf16 = jax.block_until_ready(probs_bf16)
    assert probs_bf16.shape == (B, out_dim)
    assert jnp.allclose(probs_bf16, ref, atol=2e-2, rtol=2e-2)

    # NOTE: the torch module returns a Bernoulli distribution object; sampling /
    # log_prob are trivially derived from `probs` outside the kernel.
    print("KERNEL_OK")
</pallas_src>

<mosaic_0001>
module attributes {stable_mosaic.version = 11 : i64} {
  func.func @_decoder_kernel(%arg0: i32, %arg1: i32, %arg2: memref<8x128xf32, #tpu.memory_space<vmem>>, %arg3: memref<128x128xf32, #tpu.memory_space<vmem>>, %arg4: memref<1x128xf32, #tpu.memory_space<vmem>>, %arg5: memref<128x128xf32, #tpu.memory_space<vmem>>, %arg6: memref<1x128xf32, #tpu.memory_space<vmem>>, %arg7: memref<128x256xf32, #tpu.memory_space<vmem>>, %arg8: memref<1x256xf32, #tpu.memory_space<vmem>>, %arg9: memref<8x256xf32, #tpu.memory_space<vmem>>) attributes {dimension_semantics = [#tpu.dimension_semantics<parallel>, #tpu.dimension_semantics<parallel>], iteration_bounds = array<i64: 1, 1>, scalar_prefetch = 0 : i64, scratch_operands = 0 : i64, tpu.core_type = #tpu.core_type<tc>, window_params = [{transform_indices = @transform_0, window_bounds = array<i64: 8, 128>}, {pipeline_mode = #tpu.pipeline_mode<synchronous>, transform_indices = @transform_1, window_bounds = array<i64: 128, 128>}, {pipeline_mode = #tpu.pipeline_mode<synchronous>, transform_indices = @transform_2, window_bounds = array<i64: 1, 128>}, {pipeline_mode = #tpu.pipeline_mode<synchronous>, transform_indices = @transform_3, window_bounds = array<i64: 128, 128>}, {pipeline_mode = #tpu.pipeline_mode<synchronous>, transform_indices = @transform_4, window_bounds = array<i64: 1, 128>}, {transform_indices = @transform_5, window_bounds = array<i64: 128, 256>}, {transform_indices = @transform_6, window_bounds = array<i64: 1, 256>}, {transform_indices = @transform_7, window_bounds = array<i64: 8, 256>}]} {
    %c0 = arith.constant 0 : index
    %c0_0 = arith.constant 0 : index
    %0 = vector.load %arg2[%c0, %c0_0] : memref<8x128xf32, #tpu.memory_space<vmem>>, vector<8x128xf32>
    %c0_1 = arith.constant 0 : index
    %c0_2 = arith.constant 0 : index
    %1 = vector.load %arg3[%c0_1, %c0_2] : memref<128x128xf32, #tpu.memory_space<vmem>>, vector<128x128xf32>
    %cst = arith.constant dense<0.000000e+00> : vector<8x128xf32>
    %2 = tpu.matmul %0, %1, %cst {dimension_numbers = #tpu.dot_dimension_numbers<[1], [0], [0], [1], [0, 0, 1, 1], [], []>} : vector<8x128xf32>, vector<128x128xf32>, vector<8x128xf32> -> vector<8x128xf32>
    %c0_3 = arith.constant 0 : index
    %c0_4 = arith.constant 0 : index
    %3 = vector.load %arg4[%c0_3, %c0_4] : memref<1x128xf32, #tpu.memory_space<vmem>>, vector<1x128xf32>
    %4 = vector.broadcast %3 : vector<1x128xf32> to vector<8x128xf32>
    %5 = arith.addf %2, %4 : vector<8x128xf32>
    %cst_5 = arith.constant 0.000000e+00 : f32
    %6 = vector.broadcast %cst_5 : f32 to vector<8x128xf32>
    %7 = arith.maximumf %5, %6 : vector<8x128xf32>
    %c0_6 = arith.constant 0 : index
    %c0_7 = arith.constant 0 : index
    %8 = vector.load %arg5[%c0_6, %c0_7] : memref<128x128xf32, #tpu.memory_space<vmem>>, vector<128x128xf32>
    %cst_8 = arith.constant dense<0.000000e+00> : vector<8x128xf32>
    %9 = tpu.matmul %7, %8, %cst_8 {dimension_numbers = #tpu.dot_dimension_numbers<[1], [0], [0], [1], [0, 0, 1, 1], [], []>} : vector<8x128xf32>, vector<128x128xf32>, vector<8x128xf32> -> vector<8x128xf32>
    %c0_9 = arith.constant 0 : index
    %c0_10 = arith.constant 0 : index
    %10 = vector.load %arg6[%c0_9, %c0_10] : memref<1x128xf32, #tpu.memory_space<vmem>>, vector<1x128xf32>
    %11 = vector.broadcast %10 : vector<1x128xf32> to vector<8x128xf32>
    %12 = arith.addf %9, %11 : vector<8x128xf32>
    %cst_11 = arith.constant 0.000000e+00 : f32
    %13 = vector.broadcast %cst_11 : f32 to vector<8x128xf32>
    %14 = arith.maximumf %12, %13 : vector<8x128xf32>
    %c0_12 = arith.constant 0 : index
    %c0_13 = arith.constant 0 : index
    %15 = vector.load %arg7[%c0_12, %c0_13] : memref<128x256xf32, #tpu.memory_space<vmem>>, vector<128x256xf32>
    %cst_14 = arith.constant dense<0.000000e+00> : vector<8x256xf32>
    %16 = tpu.matmul %14, %15, %cst_14 {dimension_numbers = #tpu.dot_dimension_numbers<[1], [0], [0], [1], [0, 0, 1, 1], [], []>} : vector<8x128xf32>, vector<128x256xf32>, vector<8x256xf32> -> vector<8x256xf32>
    %c0_15 = arith.constant 0 : index
    %c0_16 = arith.constant 0 : index
    %17 = vector.load %arg8[%c0_15, %c0_16] : memref<1x256xf32, #tpu.memory_space<vmem>>, vector<1x256xf32>
    %18 = vector.broadcast %17 : vector<1x256xf32> to vector<8x256xf32>
    %19 = arith.addf %16, %18 : vector<8x256xf32>
    %20 = arith.negf %19 : vector<8x256xf32>
    %21 = math.exp %20 : vector<8x256xf32>
    %cst_17 = arith.constant 1.000000e+00 : f32
    %22 = vector.broadcast %cst_17 : f32 to vector<8x256xf32>
    %23 = arith.addf %22, %21 : vector<8x256xf32>
    %24 = arith.divf %22, %23 : vector<8x256xf32>
    %c0_18 = arith.constant 0 : index
    %c0_19 = arith.constant 0 : index
    %25 = vector.load %arg9[%c0_18, %c0_19] : memref<8x256xf32, #tpu.memory_space<vmem>>, vector<8x256xf32>
    tpu.vector_store %arg9[%c0_18, %c0_19], %24 {strides = array<i32>} : memref<8x256xf32, #tpu.memory_space<vmem>>, vector<8x256xf32>,
    return
  }
  func.func @transform_0(%arg0: i32, %arg1: i32) -> (i32, i32) {
    %c0_i32 = arith.constant 0 : i32
    %c0_i32_0 = arith.constant 0 : i32
    return %arg0, %c0_i32 : i32, i32
  }
  func.func @transform_1(%arg0: i32, %arg1: i32) -> (i32, i32) {
    %c0_i32 = arith.constant 0 : i32
    %c0_i32_0 = arith.constant 0 : i32
    %c0_i32_1 = arith.constant 0 : i32
    return %c0_i32, %c0_i32_0 : i32, i32
  }
  func.func @transform_2(%arg0: i32, %arg1: i32) -> (i32, i32) {
    %c0_i32 = arith.constant 0 : i32
    %c0_i32_0 = arith.constant 0 : i32
    %c0_i32_1 = arith.constant 0 : i32
    return %c0_i32, %c0_i32_0 : i32, i32
  }
  func.func @transform_3(%arg0: i32, %arg1: i32) -> (i32, i32) {
    %c0_i32 = arith.constant 0 : i32
    %c0_i32_0 = arith.constant 0 : i32
    %c0_i32_1 = arith.constant 0 : i32
    return %c0_i32, %c0_i32_0 : i32, i32
  }
  func.func @transform_4(%arg0: i32, %arg1: i32) -> (i32, i32) {
    %c0_i32 = arith.constant 0 : i32
    %c0_i32_0 = arith.constant 0 : i32
    %c0_i32_1 = arith.constant 0 : i32
    return %c0_i32, %c0_i32_0 : i32, i32
  }
  func.func @transform_5(%arg0: i32, %arg1: i32) -> (i32, i32) {
    %c0_i32 = arith.constant 0 : i32
    %c0_i32_0 = arith.constant 0 : i32
    return %c0_i32, %arg1 : i32, i32
  }
  func.func @transform_6(%arg0: i32, %arg1: i32) -> (i32, i32) {
    %c0_i32 = arith.constant 0 : i32
    %c0_i32_0 = arith.constant 0 : i32
    return %c0_i32, %arg1 : i32, i32
  }
  func.func @transform_7(%arg0: i32, %arg1: i32) -> (i32, i32) {
    %c0_i32 = arith.constant 0 : i32
    return %arg0, %arg1 : i32, i32
  }
}

</mosaic_0001>

<bundles_post_ra>
// kernel: tpu_custom_call.1
= control target key start
LH: loop header
LB: loop body
LE: loop exit
PB: predicated region body
PF: predicated region fallthrough
CT: control target
= control target key end

     0   :  { %12 = vsyncpa [#allocation3], 0  ;;  %s569_s0 = inlined_call_operand.hbm [shape: f32[8,128], index: 0, kind: input, shape index: {}]   ;;  %s570_s1 = inlined_call_operand.hbm [shape: f32[128,128], index: 1, kind: input, shape index: {}]   ;;  %s571_s2 = inlined_call_operand.vmem [shape: f32[1,128], index: 2, kind: input, shape index: {}]   ;;  %s572_s3 = inlined_call_operand.hbm [shape: f32[128,128], index: 3, kind: input, shape index: {}]   ;;  %s573_s4 = inlined_call_operand.hbm [shape: f32[1,128], index: 4, kind: input, shape index: {}]   ;;  %s574_s5 = inlined_call_operand.hbm [shape: f32[128,256], index: 5, kind: input, shape index: {}]   ;;  %s575_s6 = inlined_call_operand.vmem [shape: f32[1,256], index: 6, kind: input, shape index: {}]   ;;  %s576_s7 = inlined_call_operand.hbm [shape: f32[8,256], index: 7, kind: output, shape index: {}]  }
   0x1   :  { %13 = vsyncpa [#allocation6], 0 }
   0x2   :  { %14 = vsyncpa [#allocation9], 0  ;;  %s31_s26 = sshll.u32 %s570_s1, 4  ;;  %s32_s26 = int_to_ptr.hbm [resolvable:$true] %s31_s26 }
   0x3   :  { %15 = vsyncpa [#allocation4], 0  ;;  %s495_s27 = smov [#allocation5]   ;;  %s60_s8 = sshll.u32 %s573_s4, 4  ;;  %s61_s8 = int_to_ptr.hbm [resolvable:$true] %s60_s8 }
   0x4   :  { %s33_s28 = sshll.u32 %s495_s27, 4  ;;  %s496_s9 = smov 128   ;;  %s34_s28 = int_to_ptr.vmem [resolvable:$true] %s33_s28 }
   0x5   :  { %s497_s10 = smov 8   ;;  %s498_s11 = smov [#allocation8]  }
   0x6   :  { %39 = dma.hbm_to_vmem [thread:$0]  %s32_s26, 2048, %s34_s28, [#allocation6], %s496_s9, %s496_s9, %s497_s10  }
   0x7   :  { %s62_s12 = sshll.u32 %s498_s11, 4  ;;  %s21_s15 = sshll.u32 %s569_s0, 4  ;;  %s63_s12 = int_to_ptr.vmem [resolvable:$true] %s62_s12  ;;  %s22_s15 = int_to_ptr.hbm [resolvable:$true] %s21_s15 }
   0x8   :  { %65 = dma.hbm_to_vmem [thread:$0]  %s61_s8, 16, %s63_s12, [#allocation9]  }
   0x9   :  { %s46_s17 = sshll.u32 %s572_s3, 4  ;;  %s499_s18 = smov [#allocation2]   ;;  %s47_s17 = int_to_ptr.hbm [resolvable:$true] %s46_s17 }
   0xa   :  { %s23_s19 = sshll.u32 %s499_s18, 4  ;;  %s500_s4 = smov [#allocation7]   ;;  %s24_s19 = int_to_ptr.vmem [resolvable:$true] %s23_s19 }
   0xb   :  { %26 = dma.hbm_to_vmem [thread:$0]  %s22_s15, 128, %s24_s19, [#allocation3]  }
   0xc   :  { %s48_s20 = sshll.u32 %s500_s4, 4  ;;  %s70_s23 = sshll.u32 %s574_s5, 4  ;;  %s49_s20 = int_to_ptr.vmem [resolvable:$true] %s48_s20  ;;  %s71_s23 = int_to_ptr.hbm [resolvable:$true] %s70_s23 }
   0xd   :  { %54 = dma.hbm_to_vmem [thread:$0]  %s47_s17, 2048, %s49_s20, [#allocation6], %s496_s9, %s496_s9, %s497_s10  }
   0xe   :  { %s501_s0 = smov [#allocation10]   ;;  %s502_s25 = smov 256  }
   0xf   :  { %s72_s24 = sshll.u32 %s501_s0, 4  ;;  %s503_s26 = smov 16   ;;  %s73_s24 = int_to_ptr.vmem [resolvable:$true] %s72_s24 }
  0x10   :  { %78 = dma.hbm_to_vmem [thread:$0]  %s71_s23, 4096, %s73_s24, [#allocation9], %s502_s25, %s502_s25, %s503_s26  }
  0x11   :  { %487 = dma.done.wait [#allocation3], 128  }
  0x12   :  { %488 = vsyncadd [#allocation3], 4294967168 }
  0x13   :  { %489 = dma.done.wait [#allocation6], 4096  }
  0x14   :  { %490 = vsyncadd [#allocation6], 4294963200 }
  0x15   :  { %491 = dma.done.wait [#allocation9], 4112  }
  0x16   :  { %492 = vsyncadd [#allocation9], 4294963184  ;;  %v117_v0 = vld [vmem:[#allocation5 + $0x78] sm:$0xff]  ;;  %v116_v1 = vld [vmem:[#allocation5 + $0x70] sm:$0xff]  ;;  %s309_s8 = sshll.u32 %s576_s7, 4  ;;  %s310_s8 = int_to_ptr.hbm [resolvable:$true] %s309_s8 }
  0x17   :  { %122 = vmatpush.msra.mxu0 %v117_v0  ;;  %v115_v2 = vld [vmem:[#allocation5 + $0x68] sm:$0xff]  ;;  %v114_v3 = vld [vmem:[#allocation5 + $0x60] sm:$0xff]  ;;  %v158_v4 = vld [vmem:[#allocation7 + $0x78] sm:$0xff] }
  0x18   :  { %v113_v5 = vld [vmem:[#allocation5 + $0x58] sm:$0xff]  ;;  %163 = vmatpush.msra.mxu1 %v158_v4  ;;  %v157_v6 = vld [vmem:[#allocation7 + $0x70] sm:$0xff]  ;;  %v156_v7 = vld [vmem:[#allocation7 + $0x68] sm:$0xff] }
  0x19   :  { %123 = vmatpush.msra.mxu0 %v116_v1  ;;  %v112_v8 = vld [vmem:[#allocation5 + $0x50] sm:$0xff]  ;;  %v155_v9 = vld [vmem:[#allocation7 + $0x60] sm:$0xff]  ;;  %v111_v10 = vld [vmem:[#allocation5 + $0x48] sm:$0xff] }
  0x1a   :  { %164 = vmatpush.msra.mxu1 %v157_v6  ;;  %v154_v11 = vld [vmem:[#allocation7 + $0x58] sm:$0xff]  ;;  %v110_v12 = vld [vmem:[#allocation5 + $0x40] sm:$0xff]  ;;  %v153_v13 = vld [vmem:[#allocation7 + $0x50] sm:$0xff] }
  0x1b   :  { %124 = vmatpush.msra.mxu0 %v115_v2  ;;  %v109_v14 = vld [vmem:[#allocation5 + $0x38] sm:$0xff]  ;;  %v152_v15 = vld [vmem:[#allocation7 + $0x48] sm:$0xff]  ;;  %v108_v16 = vld [vmem:[#allocation5 + $0x30] sm:$0xff] }
  0x1c   :  { %165 = vmatpush.msra.mxu1 %v156_v7  ;;  %v151_v17 = vld [vmem:[#allocation7 + $0x40] sm:$0xff]  ;;  %v107_v18 = vld [vmem:[#allocation5 + $0x28] sm:$0xff]  ;;  %v150_v19 = vld [vmem:[#allocation7 + $0x38] sm:$0xff] }
  0x1d   :  { %125 = vmatpush.msra.mxu0 %v114_v3  ;;  %v106_v20 = vld [vmem:[#allocation5 + $0x20] sm:$0xff]  ;;  %v149_v21 = vld [vmem:[#allocation7 + $0x30] sm:$0xff]  ;;  %v105_v22 = vld [vmem:[#allocation5 + $0x18] sm:$0xff] }
  0x1e   :  { %166 = vmatpush.msra.mxu1 %v155_v9  ;;  %v148_v23 = vld [vmem:[#allocation7 + $0x28] sm:$0xff]  ;;  %v104_v24 = vld [vmem:[#allocation5 + $0x10] sm:$0xff]  ;;  %v147_v25 = vld [vmem:[#allocation7 + $0x20] sm:$0xff] }
  0x1f   :  { %126 = vmatpush.msra.mxu0 %v113_v5  ;;  %v103_v26 = vld [vmem:[#allocation5 + $0x8] sm:$0xff]  ;;  %v146_v27 = vld [vmem:[#allocation7 + $0x18] sm:$0xff]  ;;  %v102_v28 = vld [vmem:[#allocation5] sm:$0xff] }
  0x20   :  { %167 = vmatpush.msra.mxu1 %v154_v11  ;;  %v101_v29 = vld [vmem:[#allocation2] sm:$0xff]  ;;  %v145_v30 = vld [vmem:[#allocation7 + $0x10] sm:$0xff]  ;;  %v144_v31 = vld [vmem:[#allocation7 + $0x8] sm:$0xff] }
  0x21   :  { %127 = vmatpush.msra.mxu0 %v112_v8  ;;  %v143_v32 = vld [vmem:[#allocation7] sm:$0xff]  ;;  %v214_v33 = vld [vmem:[#allocation10 + $0xf0] sm:$0xff]  ;;  %v213_v36 = vld [vmem:[#allocation10 + $0xe8] sm:$0xff] }
  0x22   :  { %168 = vmatpush.msra.mxu1 %v153_v13  ;;  %v215_v34 = vld [vmem:[#allocation10 + $0xf8] sm:$0xff]  ;;  %v212_v35 = vld [vmem:[#allocation10 + $0xe0] sm:$0xff]  ;;  %222 = vmatpush.msra.mxu2 %v214_v33  ;;  %v210_v37 = vld [vmem:[#allocation10 + $0xd0] sm:$0xff] }
  0x23   :  { %128 = vmatpush.msra.mxu0 %v111_v10  ;;  %242 = vmatpush.msra.mxu3 %v215_v34  ;;  %v211_v38 = vld [vmem:[#allocation10 + $0xd8] sm:$0xff]  ;;  %v208_v39 = vld [vmem:[#allocation10 + $0xc0] sm:$0xff]  ;;  %v209_v40 = vld [vmem:[#allocation10 + $0xc8] sm:$0xff] }
  0x24   :  { %169 = vmatpush.msra.mxu1 %v152_v15  ;;  %223 = vmatpush.msra.mxu2 %v212_v35  ;;  %v206_v41 = vld [vmem:[#allocation10 + $0xb0] sm:$0xff]  ;;  %v207_v42 = vld [vmem:[#allocation10 + $0xb8] sm:$0xff]  ;;  %v204_v43 = vld [vmem:[#allocation10 + $0xa0] sm:$0xff] }
  0x25   :  { %129 = vmatpush.msra.mxu0 %v110_v12  ;;  %243 = vmatpush.msra.mxu3 %v213_v36  ;;  %v205_v44 = vld [vmem:[#allocation10 + $0xa8] sm:$0xff]  ;;  %v202_v45 = vld [vmem:[#allocation10 + $0x90] sm:$0xff]  ;;  %v203_v46 = vld [vmem:[#allocation10 + $0x98] sm:$0xff] }
  0x26   :  { %170 = vmatpush.msra.mxu1 %v151_v17  ;;  %224 = vmatpush.msra.mxu2 %v210_v37  ;;  %v200_v47 = vld [vmem:[#allocation10 + $0x80] sm:$0xff]  ;;  %v201_v48 = vld [vmem:[#allocation10 + $0x88] sm:$0xff]  ;;  %v198_v49 = vld [vmem:[#allocation10 + $0x70] sm:$0xff] }
  0x27   :  { %130 = vmatpush.msra.mxu0 %v109_v14  ;;  %244 = vmatpush.msra.mxu3 %v211_v38  ;;  %v199_v50 = vld [vmem:[#allocation10 + $0x78] sm:$0xff]  ;;  %v196_v51 = vld [vmem:[#allocation10 + $0x60] sm:$0xff]  ;;  %v197_v52 = vld [vmem:[#allocation10 + $0x68] sm:$0xff] }
  0x28   :  { %171 = vmatpush.msra.mxu1 %v150_v19  ;;  %225 = vmatpush.msra.mxu2 %v208_v39  ;;  %v194_v53 = vld [vmem:[#allocation10 + $0x50] sm:$0xff]  ;;  %v195_v54 = vld [vmem:[#allocation10 + $0x58] sm:$0xff]  ;;  %v192_v55 = vld [vmem:[#allocation10 + $0x40] sm:$0xff] }
  0x29   :  { %131 = vmatpush.msra.mxu0 %v108_v16  ;;  %245 = vmatpush.msra.mxu3 %v209_v40  ;;  %v193_v56 = vld [vmem:[#allocation10 + $0x48] sm:$0xff]  ;;  %v190_v57 = vld [vmem:[#allocation10 + $0x30] sm:$0xff]  ;;  %v191_v58 = vld [vmem:[#allocation10 + $0x38] sm:$0xff] }
  0x2a   :  { %172 = vmatpush.msra.mxu1 %v149_v21  ;;  %226 = vmatpush.msra.mxu2 %v206_v41  ;;  %v333_v59 = vld [vmem:[%s571_s2] ss:$0 sm:$0xff]  ;;  %v188_v63 = vld [vmem:[#allocation10 + $0x20] sm:$0xff]  ;;  %v189_v0 = vld [vmem:[#allocation10 + $0x28] sm:$0xff] }
  0x2b   :  { %132 = vmatpush.msra.mxu0 %v107_v18  ;;  %246 = vmatpush.msra.mxu3 %v207_v42  ;;  %v186_v1 = vld [vmem:[#allocation10 + $0x10] sm:$0xff]  ;;  %v187_v2 = vld [vmem:[#allocation10 + $0x18] sm:$0xff]  ;;  %v184_v3 = vld [vmem:[#allocation10] sm:$0xff] }
  0x2c   :  { %173 = vmatpush.msra.mxu1 %v148_v23  ;;  %227 = vmatpush.msra.mxu2 %v204_v43  ;;  %v185_v4 = vld [vmem:[#allocation10 + $0x8] sm:$0xff]  ;;  %v334_v5 = vld [vmem:[#allocation8] ss:$0 sm:$0xff]  ;;  %v216_v9 = vld [vmem:[%s575_s6] sm:$0x3]  ;;  %s504_s6 = smov [#allocation11]  }
  0x2d   :  { %133 = vmatpush.msra.mxu0 %v106_v20  ;;  %247 = vmatpush.msra.mxu3 %v205_v44  ;;  %v218_v10 = vperm.slane %v216_v9, 0  ;;  %v219_v11 = vperm.slane %v216_v9, 1  ;;  %s307_s28 = sshll.u32 %s504_s6, 4  ;;  %s308_s28 = int_to_ptr.vmem [resolvable:$true] %s307_s28 }
  0x2e   :  { %174 = vmatpush.msra.mxu1 %v147_v25  ;;  %228 = vmatpush.msra.mxu2 %v202_v45 }
  0x2f   :  { %134 = vmatpush.msra.mxu0 %v105_v22  ;;  %248 = vmatpush.msra.mxu3 %v203_v46 }
  0x30   :  { %175 = vmatpush.msra.mxu1 %v146_v27  ;;  %229 = vmatpush.msra.mxu2 %v200_v47 }
  0x31   :  { %135 = vmatpush.msra.mxu0 %v104_v24  ;;  %249 = vmatpush.msra.mxu3 %v201_v48 }
  0x32   :  { %176 = vmatpush.msra.mxu1 %v145_v30  ;;  %230 = vmatpush.msra.mxu2 %v198_v49 }
  0x33   :  { %136 = vmatpush.msra.mxu0 %v103_v26  ;;  %250 = vmatpush.msra.mxu3 %v199_v50 }
  0x34   :  { %177 = vmatpush.msra.mxu1 %v144_v31  ;;  %231 = vmatpush.msra.mxu2 %v196_v51 }
  0x35   :  { %137 = vmatpush.msra.mxu0 %v102_v28  ;;  %251 = vmatpush.msra.mxu3 %v197_v52 }
  0x36   :  { %138 = vmatmul.f32.vlgmr.msra.gmra.mxu0 %v101_v29  ;;  %178 = vmatpush.msra.mxu1 %v143_v32 }
  0x37   :  { %232 = vmatpush.msra.mxu2 %v194_v53  ;;  %252 = vmatpush.msra.mxu3 %v195_v54 }
  0x39   :  { %233 = vmatpush.msra.mxu2 %v192_v55  ;;  %253 = vmatpush.msra.mxu3 %v193_v56 }
  0x3b   :  { %234 = vmatpush.msra.mxu2 %v190_v57  ;;  %254 = vmatpush.msra.mxu3 %v191_v58 }
  0x3d   :  { %235 = vmatpush.msra.mxu2 %v188_v63  ;;  %255 = vmatpush.msra.mxu3 %v189_v0 }
  0x3f   :  { %236 = vmatpush.msra.mxu2 %v186_v1  ;;  %256 = vmatpush.msra.mxu3 %v187_v2 }
  0x41   :  { %237 = vmatpush.msra.mxu2 %v184_v3  ;;  %257 = vmatpush.msra.mxu3 %v185_v4 }
  0xb3   :  { %v139_v60 = vpop.f32.mrf.mxu0 }
  0xb4   :  { %v140_v61 = vadd.f32 %v333_v59, %v139_v60 }
  0xb6   :  { %v142_v62 = vmax.f32 %v140_v61, 0.0 }
  0xb8   :  { %179 = vmatmul.f32.vlgmr.msra.gmra.mxu1 %v142_v62 }
 0x135   :  { %v180_v6 = vpop.f32.mrf.mxu1 }
 0x136   :  { %v181_v7 = vadd.f32 %v334_v5, %v180_v6 }
 0x138   :  { %v183_v8 = vmax.f32 %v181_v7, 0.0 }
 0x13a   :  { %238 = vmatmul.f32.vlgmr.msra.gmra.mxu2 %v183_v8  ;;  %258 = vmatmul.f32.vlgmr.msra.gmra.mxu3 %v183_v8 }
 0x1bd   :  { %v239_v12 = vpop.f32.mrf.mxu2  ;;  %v259_v13 = vpop.f32.mrf.mxu3 }
 0x1be   :  { %v240_v14 = vadd.f32 %v239_v12, %v218_v10  ;;  %v260_v15 = vadd.f32 %v259_v13, %v219_v11 }
 0x1c0   :  { %v321_v16 = vmul.f32 -1.442695, %v240_v14  ;;  %v322_v17 = vmul.f32 -1.442695, %v260_v15 }
 0x1c2   :  { %335 = vpow2.f32 %v321_v16 }
 0x1c3   :  { %337 = vpow2.f32 %v322_v17 }
 0x1c8   :  { %v336_v18 = vpop.eup %335 }
 0x1c9   :  { %v338_v19 = vpop.eup %337  ;;  %v268_v20 = vadd.f32 1.0, %v336_v18 }
 0x1ca   :  { %v269_v21 = vadd.f32 1.0, %v338_v19 }
 0x1cb   :  { %339 = vrcp.f32 %v268_v20  ;;  %v281_v28 = vand.u32 2147483648, %v268_v20  ;;  %v279_v30 = vand.u32 2147483647, %v268_v20  ;;  %vm275_vm2 = vweird.f32 %v268_v20 }
 0x1cc   :  { %341 = vrcp.f32 %v269_v21  ;;  %v296_v31 = vand.u32 2147483648, %v269_v21  ;;  %v294_v33 = vand.u32 2147483647, %v269_v21  ;;  %vm290_vm4 = vweird.f32 %v269_v21 }
 0x1cd   :  { %v282_v35 = vor.u32 1.1754944e-38, %v281_v28  ;;  %vm280_vm5 = vcmp.eq.f32.partialorder %v279_v30, 8.507059e+37 }
 0x1ce   :  { %v297_v38 = vor.u32 1.1754944e-38, %v296_v31  ;;  %vm295_vm7 = vcmp.eq.f32.partialorder %v294_v33, 8.507059e+37 }
 0x1d1   :  { %v340_v22 = vpop.eup %339 }
 0x1d2   :  { %v342_v23 = vpop.eup %341  ;;  %v271_v24 = vmul.f32 %v340_v22, %v268_v20  ;;  %vm276_vm0 = vweird.f32 %v340_v22 }
 0x1d3   :  { %v286_v25 = vmul.f32 %v342_v23, %v269_v21  ;;  %vm291_vm1 = vweird.f32 %v342_v23  ;;  %vm277_vm3 = vmor %vm275_vm2, %vm276_vm0 }
 0x1d4   :  { %v272_v26 = vsub.f32 1.0, %v271_v24  ;;  %vm292_vm6 = vmor %vm290_vm4, %vm291_vm1 }
 0x1d5   :  { %v287_v27 = vsub.f32 1.0, %v286_v25 }
 0x1d6   :  { %v273_v29 = vmul.f32 %v340_v22, %v272_v26 }
 0x1d7   :  { %v288_v32 = vmul.f32 %v342_v23, %v287_v27 }
 0x1d8   :  { %v274_v34 = vadd.f32 %v340_v22, %v273_v29 }
 0x1d9   :  { %v289_v36 = vadd.f32 %v342_v23, %v288_v32 }
 0x1da   :  { %v278_v37 = vsel %vm277_vm3, %v340_v22, %v274_v34 }
 0x1db   :  { %v283_v39 = vsel %vm280_vm5, %v282_v35, %v278_v37  ;;  %v293_v40 = vsel %vm292_vm6, %v342_v23, %v289_v36 }
 0x1dc   :  { %v298_v41 = vsel %vm295_vm7, %v297_v38, %v293_v40  ;;  %300 = vst [vmem:[#allocation11] sm:$0xff] %v283_v39 }
 0x1dd   :  { %301 = vst [vmem:[#allocation11 + $0x8] sm:$0xff] %v298_v41 }
 0x1de   :  { %312 = dma.vmem_to_hbm [thread:$0]  %s308_s28, 256, %s310_s8, [#allocation4]  }
 0x1df   :  { %493 = dma.done.wait [#allocation4], 256  }
 0x1e0   :  { %494 = vsyncadd [#allocation4], 4294967040 }
 0x1e1   :  { %317 = vsyncpa [#allocation3], 1 }
 0x1e2   :  { %318 = vsyncpa [#allocation6], 1 }
 0x1e3   :  { %319 = vsyncpa [#allocation9], 1 }
 0x1e4   :  { %320 = vsyncpa [#allocation4], 1 }

</bundles_post_ra>
